<compile_context>
chip_gen: v7x
topology: tpu7x:2x2x1
jax: 0.10.0
libtpu: 0.0.40
codegen_flags: <defaults>
</compile_context>

<pallas_src>
import jax
import jax.numpy as jnp
from jax import lax
from jax.experimental import pallas as pl
from jax.experimental.pallas import tpu as pltpu


def basic_block_kernel(x_ref, w1_ref, s1_ref, b1_ref, w2_ref, s2_ref, b2_ref,
                       o_ref):
    # x_ref  : (B, L+2, Cp)  bf16, time-padded (+1 each side), channel-padded
    # w1_ref : (3*Cp, Cp)    bf16, conv1 taps concatenated along K
    # w2_ref : (3*Cp, Cp)    bf16, conv2 taps concatenated along K
    # s*/b*  : (1, Cp)       f32 folded BatchNorm scale / shift
    # o_ref  : (B, L, Cp)    f32
    B, Lp2, Cp = x_ref.shape
    L = Lp2 - 2

    x = x_ref[...]                                            # (B, L+2, Cp)

    # ---- conv1: one MXU matmul over concatenated taps (K = 3*Cp) ----------
    x_cat = jnp.concatenate(
        [x[:, 0:L, :], x[:, 1:L + 1, :], x[:, 2:L + 2, :]], axis=-1)
    h = jnp.dot(x_cat.reshape(B * L, 3 * Cp), w1_ref[...],
                preferred_element_type=jnp.float32)           # (B*L, Cp) f32

    # ---- bn1 (folded) + relu ----------------------------------------------
    h = jnp.maximum(h * s1_ref[0] + b1_ref[0], 0.0)
    h = h.reshape(B, L, Cp).astype(jnp.bfloat16)

    # ---- conv2: re-pad the hidden activation in registers (no VMEM scratch)
    zrow = jnp.zeros((B, 1, Cp), jnp.bfloat16)
    h_prev = jnp.concatenate([zrow, h[:, :L - 1, :]], axis=1)  # h[t-1]
    h_next = jnp.concatenate([h[:, 1:, :], zrow], axis=1)      # h[t+1]
    h_cat = jnp.concatenate([h_prev, h, h_next], axis=-1)      # (B, L, 3*Cp)
    o = jnp.dot(h_cat.reshape(B * L, 3 * Cp), w2_ref[...],
                preferred_element_type=jnp.float32)            # (B*L, Cp) f32

    # ---- bn2 (folded) + residual add + relu (f32 path) ---------------------
    o = o * s2_ref[0] + b2_ref[0]
    identity = x[:, 1:L + 1, :].astype(jnp.float32).reshape(B * L, Cp)
    o_ref[...] = jnp.maximum(o + identity, 0.0).reshape(B, L, Cp).astype(
        o_ref.dtype)


def basic_block_1d(x_ncl, w1_oiw, g1, be1, m1, v1, w2_oiw, g2, be2, m2, v2,
                   eps=1e-5, batch_tile=8):
    """BasicBlock1D forward. x_ncl: (N, C, L) like PyTorch; returns (N, C, L)."""
    N, Cin, L = x_ncl.shape
    Cout = w1_oiw.shape[0]
    assert Cin == Cout, "stride=1 / downsample=None requires Cin == Cout"
    # TODO(synk): stride>1 / downsample path of BasicBlock1D not implemented.

    LANE = 128
    Cp = ((Cout + LANE - 1) // LANE) * LANE          # lane-dense channel pad
    B_TILE = max(1, min(batch_tile, N))              # batches folded per step
    Np = ((N + B_TILE - 1) // B_TILE) * B_TILE       # pad batch to tile mult

    # Fold eval-mode BatchNorm into per-channel affine: y = x*scale + shift.
    s1 = (g1 / jnp.sqrt(v1 + eps)).astype(jnp.float32)
    b1 = (be1 - m1 * s1).astype(jnp.float32)
    s2 = (g2 / jnp.sqrt(v2 + eps)).astype(jnp.float32)
    b2 = (be2 - m2 * s2).astype(jnp.float32)

    def pad_c(v):
        return jnp.pad(v, (0, Cp - Cout)).reshape(1, Cp)

    # NCL -> NLC bf16; pad: time +1 each side, channels -> Cp, batch -> Np.
    x_nlc = jnp.transpose(x_ncl, (0, 2, 1)).astype(jnp.bfloat16)
    x_pad = jnp.pad(x_nlc, ((0, Np - N), (1, 1), (0, Cp - Cin)))

    # PyTorch Conv1d weight (O, I, K=3) -> concatenated-K (3*Cp, Cp), bf16.
    # Row block k holds tap k (input offset t+k-1); matches the kernel concat.
    def cat_w(w_oiw):
        w_kio = jnp.transpose(w_oiw, (2, 1, 0))                    # (3, I, O)
        w_kio = jnp.pad(w_kio, ((0, 0), (0, Cp - Cin), (0, Cp - Cout)))
        return w_kio.reshape(3 * Cp, Cp).astype(jnp.bfloat16)

    w1c, w2c = cat_w(w1_oiw), cat_w(w2_oiw)

    out_nlc = pl.pallas_call(
        basic_block_kernel,
        out_shape=jax.ShapeDtypeStruct((Np, L, Cp), jnp.float32),
        grid=(Np // B_TILE,),
        in_specs=[
            pl.BlockSpec((B_TILE, L + 2, Cp), lambda n: (n, 0, 0)),
            # Grid-invariant operands (constant index_map): DMA'd once and
            # revisited across the grid, not re-fetched per step.
            pl.BlockSpec((3 * Cp, Cp), lambda n: (0, 0)),
            pl.BlockSpec((1, Cp), lambda n: (0, 0)),
            pl.BlockSpec((1, Cp), lambda n: (0, 0)),
            pl.BlockSpec((3 * Cp, Cp), lambda n: (0, 0)),
            pl.BlockSpec((1, Cp), lambda n: (0, 0)),
            pl.BlockSpec((1, Cp), lambda n: (0, 0)),
        ],
        out_specs=pl.BlockSpec((B_TILE, L, Cp), lambda n: (n, 0, 0)),
        compiler_params=pltpu.CompilerParams(
            dimension_semantics=("parallel",)),
    )(x_pad, w1c, pad_c(s1), pad_c(b1), w2c, pad_c(s2), pad_c(b2))

    # Drop batch/channel padding, NLC -> NCL (PyTorch layout).
    return jnp.transpose(out_nlc[:N, :, :Cout], (0, 2, 1))


def ref_forward(x, w1, s1, b1, w2, s2, b2):
    """Pure-JAX reference with the same bf16-operand / f32-accum policy."""
    dn = ('NCH', 'OIH', 'NCH')
    hp = lax.Precision.HIGHEST
    xb = x.astype(jnp.bfloat16).astype(jnp.float32)
    w1b = w1.astype(jnp.bfloat16).astype(jnp.float32)
    w2b = w2.astype(jnp.bfloat16).astype(jnp.float32)
    h = lax.conv_general_dilated(xb, w1b, (1,), [(1, 1)],
                                 dimension_numbers=dn, precision=hp)
    h = jnp.maximum(h * s1[None, :, None] + b1[None, :, None], 0.0)
    hb = h.astype(jnp.bfloat16).astype(jnp.float32)
    o = lax.conv_general_dilated(hb, w2b, (1,), [(1, 1)],
                                 dimension_numbers=dn, precision=hp)
    o = o * s2[None, :, None] + b2[None, :, None]
    return jnp.maximum(o + xb, 0.0)


if __name__ == "__main__":
    key = jax.random.PRNGKey(0)
    N, C, L = 3, 16, 16                    # batch, channels, sequence length

    ks = jax.random.split(key, 11)
    x = jax.random.normal(ks[0], (N, C, L), jnp.float32)

    # Conv weights (PyTorch shape: (out, in, kernel=3)), deterministic init.
    w1 = 0.1 * jax.random.normal(ks[1], (C, C, 3), jnp.float32)
    w2 = 0.1 * jax.random.normal(ks[2], (C, C, 3), jnp.float32)

    # BatchNorm parameters / running stats (deterministic, non-trivial).
    g1 = 1.0 + 0.1 * jax.random.normal(ks[3], (C,), jnp.float32)
    be1 = 0.1 * jax.random.normal(ks[4], (C,), jnp.float32)
    m1 = 0.05 * jax.random.normal(ks[5], (C,), jnp.float32)
    v1 = 1.0 + 0.1 * jnp.abs(jax.random.normal(ks[6], (C,), jnp.float32))
    g2 = 1.0 + 0.1 * jax.random.normal(ks[7], (C,), jnp.float32)
    be2 = 0.1 * jax.random.normal(ks[8], (C,), jnp.float32)
    m2 = 0.05 * jax.random.normal(ks[9], (C,), jnp.float32)
    v2 = 1.0 + 0.1 * jnp.abs(jax.random.normal(ks[10], (C,), jnp.float32))

    out = basic_block_1d(x, w1, g1, be1, m1, v1, w2, g2, be2, m2, v2,
                         batch_tile=2)     # grid of 2 steps, exercises padding
    out = jax.block_until_ready(out)

    # Validate against the pure-JAX reference (same bf16 rounding policy).
    eps = 1e-5
    s1 = g1 / jnp.sqrt(v1 + eps); b1 = be1 - m1 * s1
    s2 = g2 / jnp.sqrt(v2 + eps); b2 = be2 - m2 * s2
    ref = ref_forward(x, w1, s1, b1, w2, s2, b2)

    assert out.shape == (N, C, L)
    assert jnp.allclose(out, ref, atol=1e-3, rtol=1e-3), float(
        jnp.max(jnp.abs(out - ref)))
    print("KERNEL_OK")
</pallas_src>

<mosaic_0001>
module attributes {stable_mosaic.version = 11 : i64} {
  func.func @basic_block_kernel(%arg0: i32, %arg1: memref<2x18x128xbf16, #tpu.memory_space<vmem>>, %arg2: memref<384x128xbf16, #tpu.memory_space<vmem>>, %arg3: memref<1x128xf32, #tpu.memory_space<vmem>>, %arg4: memref<1x128xf32, #tpu.memory_space<vmem>>, %arg5: memref<384x128xbf16, #tpu.memory_space<vmem>>, %arg6: memref<1x128xf32, #tpu.memory_space<vmem>>, %arg7: memref<1x128xf32, #tpu.memory_space<vmem>>, %arg8: memref<2x16x128xf32, #tpu.memory_space<vmem>>) attributes {dimension_semantics = [#tpu.dimension_semantics<parallel>], iteration_bounds = array<i64: 2>, scalar_prefetch = 0 : i64, scratch_operands = 0 : i64, tpu.core_type = #tpu.core_type<tc>, window_params = [{transform_indices = @transform_0, window_bounds = array<i64: 2, 18, 128>}, {pipeline_mode = #tpu.pipeline_mode<synchronous>, transform_indices = @transform_1, window_bounds = array<i64: 384, 128>}, {pipeline_mode = #tpu.pipeline_mode<synchronous>, transform_indices = @transform_2, window_bounds = array<i64: 1, 128>}, {pipeline_mode = #tpu.pipeline_mode<synchronous>, transform_indices = @transform_3, window_bounds = array<i64: 1, 128>}, {pipeline_mode = #tpu.pipeline_mode<synchronous>, transform_indices = @transform_4, window_bounds = array<i64: 384, 128>}, {pipeline_mode = #tpu.pipeline_mode<synchronous>, transform_indices = @transform_5, window_bounds = array<i64: 1, 128>}, {pipeline_mode = #tpu.pipeline_mode<synchronous>, transform_indices = @transform_6, window_bounds = array<i64: 1, 128>}, {transform_indices = @transform_7, window_bounds = array<i64: 2, 16, 128>}]} {
    %c0 = arith.constant 0 : index
    %c0_0 = arith.constant 0 : index
    %c0_1 = arith.constant 0 : index
    %0 = vector.load %arg1[%c0, %c0_0, %c0_1] : memref<2x18x128xbf16, #tpu.memory_space<vmem>>, vector<2x18x128xbf16>
    %1 = vector.extract_strided_slice %0 {offsets = [0, 0, 0], sizes = [2, 16, 128], strides = [1, 1, 1]} : vector<2x18x128xbf16> to vector<2x16x128xbf16>
    %2 = vector.extract_strided_slice %0 {offsets = [0, 1, 0], sizes = [2, 16, 128], strides = [1, 1, 1]} : vector<2x18x128xbf16> to vector<2x16x128xbf16>
    %3 = vector.extract_strided_slice %0 {offsets = [0, 2, 0], sizes = [2, 16, 128], strides = [1, 1, 1]} : vector<2x18x128xbf16> to vector<2x16x128xbf16>
    %4 = tpu.concatenate %1, %2, %3 in 2 : vector<2x16x128xbf16>, vector<2x16x128xbf16>, vector<2x16x128xbf16> -> vector<2x16x384xbf16>
    %5 = vector.shape_cast %4 : vector<2x16x384xbf16> to vector<32x384xbf16>
    %c0_2 = arith.constant 0 : index
    %c0_3 = arith.constant 0 : index
    %6 = vector.load %arg2[%c0_2, %c0_3] : memref<384x128xbf16, #tpu.memory_space<vmem>>, vector<384x128xbf16>
    %cst = arith.constant dense<0.000000e+00> : vector<32x128xf32>
    %7 = tpu.matmul %5, %6, %cst {dimension_numbers = #tpu.dot_dimension_numbers<[1], [0], [0], [1], [0, 0, 1, 1], [], []>} : vector<32x384xbf16>, vector<384x128xbf16>, vector<32x128xf32> -> vector<32x128xf32>
    %c0_4 = arith.constant 0 : index
    %c0_5 = arith.constant 0 : index
    %8 = vector.load %arg3[%c0_4, %c0_5] : memref<1x128xf32, #tpu.memory_space<vmem>>, vector<1x128xf32>
    %9 = vector.shape_cast %8 : vector<1x128xf32> to vector<128xf32>
    %10 = vector.shape_cast %9 : vector<128xf32> to vector<1x128xf32>
    %11 = vector.broadcast %10 : vector<1x128xf32> to vector<32x128xf32>
    %12 = arith.mulf %7, %11 : vector<32x128xf32>
    %c0_6 = arith.constant 0 : index
    %c0_7 = arith.constant 0 : index
    %13 = vector.load %arg4[%c0_6, %c0_7] : memref<1x128xf32, #tpu.memory_space<vmem>>, vector<1x128xf32>
    %14 = vector.shape_cast %13 : vector<1x128xf32> to vector<128xf32>
    %15 = vector.shape_cast %14 : vector<128xf32> to vector<1x128xf32>
    %16 = vector.broadcast %15 : vector<1x128xf32> to vector<32x128xf32>
    %17 = arith.addf %12, %16 : vector<32x128xf32>
    %cst_8 = arith.constant 0.000000e+00 : f32
    %18 = vector.broadcast %cst_8 : f32 to vector<32x128xf32>
    %19 = arith.maximumf %17, %18 : vector<32x128xf32>
    %20 = vector.shape_cast %19 : vector<32x128xf32> to vector<2x16x128xf32>
    %21 = arith.truncf %20 : vector<2x16x128xf32> to vector<2x16x128xbf16>
    %cst_9 = arith.constant 0.000000e+00 : bf16
    %22 = vector.broadcast %cst_9 : bf16 to vector<2x1x128xbf16>
    %23 = vector.extract_strided_slice %21 {offsets = [0, 0, 0], sizes = [2, 15, 128], strides = [1, 1, 1]} : vector<2x16x128xbf16> to vector<2x15x128xbf16>
    %24 = tpu.concatenate %22, %23 in 1 : vector<2x1x128xbf16>, vector<2x15x128xbf16> -> vector<2x16x128xbf16>
    %25 = vector.extract_strided_slice %21 {offsets = [0, 1, 0], sizes = [2, 15, 128], strides = [1, 1, 1]} : vector<2x16x128xbf16> to vector<2x15x128xbf16>
    %26 = tpu.concatenate %25, %22 in 1 : vector<2x15x128xbf16>, vector<2x1x128xbf16> -> vector<2x16x128xbf16>
    %27 = tpu.concatenate %24, %21, %26 in 2 : vector<2x16x128xbf16>, vector<2x16x128xbf16>, vector<2x16x128xbf16> -> vector<2x16x384xbf16>
    %28 = vector.shape_cast %27 : vector<2x16x384xbf16> to vector<32x384xbf16>
    %c0_10 = arith.constant 0 : index
    %c0_11 = arith.constant 0 : index
    %29 = vector.load %arg5[%c0_10, %c0_11] : memref<384x128xbf16, #tpu.memory_space<vmem>>, vector<384x128xbf16>
    %cst_12 = arith.constant dense<0.000000e+00> : vector<32x128xf32>
    %30 = tpu.matmul %28, %29, %cst_12 {dimension_numbers = #tpu.dot_dimension_numbers<[1], [0], [0], [1], [0, 0, 1, 1], [], []>} : vector<32x384xbf16>, vector<384x128xbf16>, vector<32x128xf32> -> vector<32x128xf32>
    %c0_13 = arith.constant 0 : index
    %c0_14 = arith.constant 0 : index
    %31 = vector.load %arg6[%c0_13, %c0_14] : memref<1x128xf32, #tpu.memory_space<vmem>>, vector<1x128xf32>
    %32 = vector.shape_cast %31 : vector<1x128xf32> to vector<128xf32>
    %33 = vector.shape_cast %32 : vector<128xf32> to vector<1x128xf32>
    %34 = vector.broadcast %33 : vector<1x128xf32> to vector<32x128xf32>
    %35 = arith.mulf %30, %34 : vector<32x128xf32>
    %c0_15 = arith.constant 0 : index
    %c0_16 = arith.constant 0 : index
    %36 = vector.load %arg7[%c0_15, %c0_16] : memref<1x128xf32, #tpu.memory_space<vmem>>, vector<1x128xf32>
    %37 = vector.shape_cast %36 : vector<1x128xf32> to vector<128xf32>
    %38 = vector.shape_cast %37 : vector<128xf32> to vector<1x128xf32>
    %39 = vector.broadcast %38 : vector<1x128xf32> to vector<32x128xf32>
    %40 = arith.addf %35, %39 : vector<32x128xf32>
    %41 = vector.extract_strided_slice %0 {offsets = [0, 1, 0], sizes = [2, 16, 128], strides = [1, 1, 1]} : vector<2x18x128xbf16> to vector<2x16x128xbf16>
    %42 = arith.extf %41 : vector<2x16x128xbf16> to vector<2x16x128xf32>
    %43 = vector.shape_cast %42 : vector<2x16x128xf32> to vector<32x128xf32>
    %44 = arith.addf %40, %43 : vector<32x128xf32>
    %cst_17 = arith.constant 0.000000e+00 : f32
    %45 = vector.broadcast %cst_17 : f32 to vector<32x128xf32>
    %46 = arith.maximumf %44, %45 : vector<32x128xf32>
    %47 = vector.shape_cast %46 : vector<32x128xf32> to vector<2x16x128xf32>
    %c0_18 = arith.constant 0 : index
    %c0_19 = arith.constant 0 : index
    %c0_20 = arith.constant 0 : index
    %48 = vector.load %arg8[%c0_18, %c0_19, %c0_20] : memref<2x16x128xf32, #tpu.memory_space<vmem>>, vector<2x16x128xf32>
    tpu.vector_store %arg8[%c0_18, %c0_19, %c0_20], %47 {strides = array<i32>} : memref<2x16x128xf32, #tpu.memory_space<vmem>>, vector<2x16x128xf32>,
    return
  }
  func.func @transform_0(%arg0: i32) -> (i32, i32, i32) {
    %c0_i32 = arith.constant 0 : i32
    %c0_i32_0 = arith.constant 0 : i32
    %c0_i32_1 = arith.constant 0 : i32
    return %arg0, %c0_i32, %c0_i32_0 : i32, i32, i32
  }
  func.func @transform_1(%arg0: i32) -> (i32, i32) {
    %c0_i32 = arith.constant 0 : i32
    %c0_i32_0 = arith.constant 0 : i32
    %c0_i32_1 = arith.constant 0 : i32
    return %c0_i32, %c0_i32_0 : i32, i32
  }
  func.func @transform_2(%arg0: i32) -> (i32, i32) {
    %c0_i32 = arith.constant 0 : i32
    %c0_i32_0 = arith.constant 0 : i32
    %c0_i32_1 = arith.constant 0 : i32
    return %c0_i32, %c0_i32_0 : i32, i32
  }
  func.func @transform_3(%arg0: i32) -> (i32, i32) {
    %c0_i32 = arith.constant 0 : i32
    %c0_i32_0 = arith.constant 0 : i32
    %c0_i32_1 = arith.constant 0 : i32
    return %c0_i32, %c0_i32_0 : i32, i32
  }
  func.func @transform_4(%arg0: i32) -> (i32, i32) {
    %c0_i32 = arith.constant 0 : i32
    %c0_i32_0 = arith.constant 0 : i32
    %c0_i32_1 = arith.constant 0 : i32
    return %c0_i32, %c0_i32_0 : i32, i32
  }
  func.func @transform_5(%arg0: i32) -> (i32, i32) {
    %c0_i32 = arith.constant 0 : i32
    %c0_i32_0 = arith.constant 0 : i32
    %c0_i32_1 = arith.constant 0 : i32
    return %c0_i32, %c0_i32_0 : i32, i32
  }
  func.func @transform_6(%arg0: i32) -> (i32, i32) {
    %c0_i32 = arith.constant 0 : i32
    %c0_i32_0 = arith.constant 0 : i32
    %c0_i32_1 = arith.constant 0 : i32
    return %c0_i32, %c0_i32_0 : i32, i32
  }
  func.func @transform_7(%arg0: i32) -> (i32, i32, i32) {
    %c0_i32 = arith.constant 0 : i32
    %c0_i32_0 = arith.constant 0 : i32
    %c0_i32_1 = arith.constant 0 : i32
    return %arg0, %c0_i32, %c0_i32_0 : i32, i32, i32
  }
}

</mosaic_0001>

<bundles_post_ra>
// kernel: tpu_custom_call.1
= control target key start
LH: loop header
LB: loop body
LE: loop exit
PB: predicated region body
PF: predicated region fallthrough
CT: control target
= control target key end

     0   :  { %12 = vsyncpa [#allocation3], 0  ;;  %s1899_s0 = inlined_call_operand.vmem [shape: bf16[4,18,128], index: 0, kind: input, shape index: {}]   ;;  %s1900_s1 = inlined_call_operand.hbm [shape: bf16[384,128], index: 1, kind: input, shape index: {}]   ;;  %s1901_s2 = inlined_call_operand.vmem [shape: f32[1,128], index: 2, kind: input, shape index: {}]   ;;  %s1902_s3 = inlined_call_operand.vmem [shape: f32[1,128], index: 3, kind: input, shape index: {}]   ;;  %s1903_s4 = inlined_call_operand.hbm [shape: bf16[384,128], index: 4, kind: input, shape index: {}]   ;;  %s1904_s5 = inlined_call_operand.vmem [shape: f32[1,128], index: 5, kind: input, shape index: {}]   ;;  %s1905_s6 = inlined_call_operand.vmem [shape: f32[1,128], index: 6, kind: input, shape index: {}]   ;;  %s1906_s7 = inlined_call_operand.hbm [shape: f32[4,16,128], index: 7, kind: output, shape index: {}]  }
   0x1   :  { %13 = vsyncpa [#allocation6], 0 }
   0x2   :  { %14 = vsyncpa [#allocation4], 0 }
   0x3   :  { %16 = vsyncpa [#allocation4 + $0x1], 0  ;;  %s1658_s24 = smov 0   ;;  %s1660_s25 = smov 0  }
   0x4   :  { %s1662_s26 = smov 0   ;;  %s1664_s27 = smov 0  }
   0x5 LB: > { %s1679_s28 = sadd.s32 4294967295, %s1609_s27   ;;  %s1173_s29 = sadd.s32 4294967294, %s1609_s27   ;;  %s1609_s27 = sphi %s1664_s27, %s1930_s27   ;;  %s1605_s26 = sphi %s1662_s26, %s1929_s26   ;;  %s1601_s25 = sphi %s1660_s25, %s1928_s25   ;;  %s1597_s24 = sphi %s1658_s24, %s1927_s24  }
   0x6   : > { %s1683_s30 = sadd.s32 1, %s1609_s27   ;;  %s181_s8 = sadd.s32 1, %s1605_s26 }
   0x7   : > { %s178_s9 = ssub.s32 %s1609_s27, %s1683_s30  ;;  %p191_p0 = scmp.ne.s32.totalorder %s1605_s26, %s1601_s25 }
   0x8   : > { %p179_p1 = scmp.eq.s32.totalorder %s178_s9, 0  ;;  %p192_p2 = scmp.eq.s32.totalorder %s1679_s28, 1 }
   0x9   : > { %p197_p3 = scmp.ne.s32.totalorder %s1601_s25, %s1597_s24  ;;  %p198_p4 = scmp.eq.s32.totalorder %s1173_s29, 1 }
   0xa   : > { %s1694_s10 = scalar_select %p179_p1, %s1605_s26, %s181_s8  }
   0xb   : > { %p1696_p5 = por %p192_p2, %p191_p0  ;;  %p1700_p6 = por %p198_p4, %p197_p3 }
   0xc   : > { %1910 = sst [smem:[#allocation11_spill]] %s1694_s10  ;;  %p1174_p7 = scmp.ge.s32.totalorder %s1609_s27, 1 }
   0xd   : > { %s1911_s11 = scalar_select %p1696_p5, 1, 0 }
   0xe   : > { %s1912_s12 = scalar_select %p1700_p6, 1, 0 }
   0xf   : > { %p205_p8 = scmp.lt.s32.totalorder %s1609_s27, 3  ;;  %p1907_p9 = scmp.eq.s32.totalorder %s1679_s28, 0 }
  0x10   : > { %s1611_s14 = smov [#allocation2]   ;;  %s1612_s17 = smov [#allocation5]  }
  0x11   : > { %p1707_p10 = pnand %p1174_p7, %p205_p8  ;;  %s217_s15 = sshll.u32 %s1611_s14, 4  ;;  %s218_s15 = int_to_ptr.vmem [resolvable:$true] %s217_s15 }
  0x12   : > { %s236_s18 = sshll.u32 %s1612_s17, 4  ;;  %s1483_s21 = scalar_lea.hbm %s1900_s1, 3072  ;;  %s1719_s18 = int_to_ptr.vmem [resolvable:$true] %s236_s18 }
  0x13   : > { %s1913_s13 = scalar_select %p1707_p10, 1, 0 }
  0x14   : > { %p1375_p11 = pneg %p1707_p10  ;;  %p1484_p13 = scmp.ne.s32.totalorder %s1900_s1, %s1483_s21 }
  0x15   : > { %p1490_p3 = scmp.lt.u32.totalorder %s1483_s21, %s1900_s1 }
  0x16   : > { %p1715_p12 = pnand %p1907_p9, %p1375_p11 }
  0x18   : > { %p1485_p0 = pneg %p1715_p12 }
  0x1a   : > { %p1486_p1 = pnand %p1485_p0, %p1484_p13 }
  0x1c   : > { %p1487_p2 = pneg %p1486_p1 }
  0x1e   : > { %p1492_p4 = pnand %p1490_p3, %p1487_p2 }
  0x20   : > { %1495 = shalt.err (!%p1492_p4)
}
  0x21   : > { %s1496_s9 = scalar_lea.vmem %s218_s15, 3072  ;;  %p1504_p9 = scmp.lt.s32.totalorder %s218_s15, %s218_s15 }
  0x22   : > { %p1497_p7 = scmp.ne.s32.totalorder %s218_s15, %s1496_s9  ;;  %p1505_p6 = scmp.lt.s32.totalorder %s1496_s9, %s1496_s9 }
  0x24   : > { %p1499_p8 = pnand %p1497_p7, %p1485_p0  ;;  %p1506_p5 = por %p1505_p6, %p1504_p9 }
  0x26   : > { %p1500_p11 = pneg %p1499_p8 }
  0x28   : > { %p1507_p10 = pnand %p1506_p5, %p1500_p11 }
  0x2a   : > { %1510 = shalt.err (!%p1507_p10)
}
  0x2b   : > { %s1613_s14 = smov 64   ;;  %s1614_s17 = smov 4  }
  0x2c   : > { %1378 = dma.hbm_to_vmem [thread:$0]  (!%p1715_p12), %s1900_s1, 3072, %s218_s15, [#allocation3], %s1613_s14, %s1613_s14, %s1614_s17  }
  0x2d   : > { %s1511_s23 = scalar_lea.hbm %s1903_s4, 3072 }
  0x2e   : > { %p1512_p13 = scmp.ne.s32.totalorder %s1903_s4, %s1511_s23  ;;  %p1518_p9 = scmp.lt.u32.totalorder %s1511_s23, %s1903_s4 }
  0x30   : > { %p1514_p5 = pnand %p1512_p13, %p1485_p0 }
  0x32   : > { %p1515_p6 = pneg %p1514_p5 }
  0x34   : > { %p1520_p10 = pnand %p1518_p9, %p1515_p6 }
  0x36   : > { %1523 = shalt.err (!%p1520_p10)
}
  0x37   : > { %s1524_s15 = scalar_lea.vmem %s1719_s18, 3072  ;;  %p1532_p4 = scmp.lt.s32.totalorder %s1719_s18, %s1719_s18 }
  0x38   : > { %p1525_p1 = scmp.ne.s32.totalorder %s1719_s18, %s1524_s15  ;;  %p1533_p7 = scmp.lt.s32.totalorder %s1524_s15, %s1524_s15 }
  0x3a   : > { %p1527_p2 = pnand %p1525_p1, %p1485_p0  ;;  %p1534_p8 = por %p1533_p7, %p1532_p4 }
  0x3c   : > { %p1528_p3 = pneg %p1527_p2 }
  0x3e   : > { %p1535_p11 = pnand %p1534_p8, %p1528_p3 }
  0x40   : > { %1538 = shalt.err (!%p1535_p11)
}
  0x41   : > { %1381 = dma.hbm_to_vmem [thread:$0]  (!%p1715_p12), %s1903_s4, 3072, %s1719_s18, [#allocation6], %s1613_s14, %s1613_s14, %s1614_s17  }
  0x42   : > { %p1915_p13 = scmp.ne.s32.totalorder %s1913_s13, 0 }
  0x43   : > { %p1916_p5 = scmp.eq.s32.totalorder (!%p1915_p13), %s1679_s28, 0 }
  0x44   : > { %268 = sbr.rel (%p1915_p13) target bundleno = 598 (0x256), region = 48 }
  0x4b   : > { %1584 = dma.done.wait (%p1916_p5), [#allocation3], 3072   ;;  %p1917_p0 = pmov %p1916_p5 }
  0x4d   : > { %1586 = vsyncadd (%p1917_p0), [#allocation3], 4294964224  ;;  %p1918_p6 = pmov %p1917_p0 }
  0x4e   : > { %p1919_p9 = pmov %p1917_p0 }
  0x4f   : > { %1588 = dma.done.wait (%p1918_p6), [#allocation6], 3072  }
  0x50   : > { %1590 = vsyncadd (%p1919_p9), [#allocation6], 4294964224  ;;  %v1429_v0 = vld [vmem:[#allocation2 + $0x40] sm:$0xff]   ;;  %v1432_v3 = vld [vmem:[#allocation2 + $0x48] sm:$0xff]   ;;  %s1182_s13 = sshll.u32 %s1679_s28, 1  ;;  %vm365_vm1 = vcmask 1046528  }
  0x51   : > { %v1430_v1 = vld [vmem:[#allocation2 + $0x80] sm:$0xff]   ;;  %1248 = vmatprep.subr.bf16.mxu0 %v1429_v0  ;;  %v1433_v4 = vld [vmem:[#allocation2 + $0x88] sm:$0xff]   ;;  %v1435_v6 = vld [vmem:[#allocation2 + $0x50] sm:$0xff]   ;;  %p306_p12 = scmp.lt.s32.totalorder %s1182_s13, 3  ;;  %vm338_vm0 = vsmask.f32 7424 }
  0x52   : > { %v1431_v2 = vld [vmem:[#allocation2] sm:$0xff]   ;;  %1324 = vmatprep.subr.bf16.mxu1 %v1430_v1  ;;  %v1434_v5 = vld [vmem:[#allocation2 + $0x8] sm:$0xff]   ;;  %v1436_v7 = vld [vmem:[#allocation2 + $0x90] sm:$0xff]   ;;  %vm708_vm2 = vcmask 1040384   ;;  %vm709_vm3 = vsmask.f32 256 }
  0x53   : > { %1249 = vmatpush3.bf16.msra.mxu0 %v1431_v2  ;;  %1325 = vmatpush3.bf16.msra.mxu1 %v1430_v1  ;;  %v1437_v8 = vld [vmem:[#allocation2 + $0x10] sm:$0xff]   ;;  %v1438_v9 = vld [vmem:[#allocation2 + $0x58] sm:$0xff]   ;;  %v1441_v12 = vld [vmem:[#allocation2 + $0x60] sm:$0xff]   ;;  %s1932_s13 = smov (!%p306_p12, %s1182_s13), 3  ;;  %vm719_vm4 = vcmask 1047552   ;;  %s302_s9 = sand.u32 1, %s1601_s25  }
  0x54   : > { %1250 = vmatprep.subr.bf16.mxu0 %v1432_v3  ;;  %1326 = vmatprep.subr.bf16.mxu1 %v1433_v4  ;;  %v1439_v10 = vld [vmem:[#allocation2 + $0x98] sm:$0xff]   ;;  %v1442_v13 = vld [vmem:[#allocation2 + $0xa0] sm:$0xff]   ;;  %v1444_v15 = vld [vmem:[#allocation2 + $0x68] sm:$0xff]   ;;  %s1364_s16 = smul.u32 12, %s1932_s13  ;;  %s1181_s19 = sshll.u32 %s302_s9, 5 }
  0x55   : > { %v1440_v11 = vld [vmem:[#allocation2 + $0x18] sm:$0xff]   ;;  %v1443_v14 = vld [vmem:[#allocation2 + $0x20] sm:$0xff]   ;;  %v1445_v16 = vld [vmem:[#allocation2 + $0xa8] sm:$0xff]   ;;  %s1247_s13 = sshll.u32 %s1679_s28, 9  ;;  %s1858_s28 = scalar_lea.sflag [#allocation4], %s302_s9 }
  0x56   : > { %v1446_v17 = vld [vmem:[#allocation2 + $0x28] sm:$0xff]   ;;  %v1447_v18 = vld [vmem:[#allocation2 + $0x70] sm:$0xff]   ;;  %s310_s17 = scalar_lea.vmem %s1899_s0, %s1364_s16  ;;  %v1450_v21 = vld [vmem:[#allocation2 + $0x78] sm:$0xff]   ;;  %s304_s16 = scalar_lea.vmem [#allocation7], %s1181_s19 }
  0x57   : > { %1251 = vmatpush3.bf16.msra.mxu0 %v1434_v5  ;;  %1327 = vmatpush3.bf16.msra.mxu1 %v1433_v4  ;;  %v1448_v19 = vld [vmem:[#allocation2 + $0xb0] sm:$0xff]   ;;  %v1451_v22 = vld [vmem:[#allocation2 + $0xb8] sm:$0xff]   ;;  %v1782_v23 = vld [vmem:[%s310_s17] sm:$0xff]   ;;  %s1089_s18 = sshll.u32 %s304_s16, 4  ;;  %s1852_s20 = scalar_lea.hbm %s1906_s7, %s1247_s13  ;;  %s1854_s18 = int_to_ptr.vmem [resolvable:$true] %s1089_s18 }
  0x58   : > { %1252 = vmatprep.subr.bf16.mxu0 %v1435_v6  ;;  %1328 = vmatprep.subr.bf16.mxu1 %v1436_v7  ;;  %v1449_v20 = vld [vmem:[#allocation2 + $0x30] sm:$0xff]   ;;  %v1784_v24 = vld [vmem:[%s310_s17 + $0x8] sm:$0x1]  ;;  %v1452_v29 = vld [vmem:[#allocation2 + $0x38] sm:$0xff]   ;;  %v340_v30 = vshrl.u32 %v1782_v23, 16  ;;  %v342_v31 = vshll.u32 %v1782_v23, 16 }
  0x59   : > { %v1786_v25 = vld [vmem:[%s310_s17 + $0xc] sm:$0xff]   ;;  %v1186_v26 = vcombine.low %v1784_v24, %v1784_v24  ;;  %v1790_v27 = vld [vmem:[%s310_s17 + $0x14] sm:$0x1]  ;;  %v366_v33 = vrot.slane %v1782_v23, 1  ;;  %v1457_v40 = vld [vmem:[#allocation5 + $0x40] sm:$0xff]   ;;  %s1539_s21 = scalar_lea.vmem %s1854_s18, 512 }
  0x5a   : > { %v1187_v28 = vcombine.low %v1790_v27, %v1790_v27  ;;  %v369_v35 = vrot.slane %v1786_v25, 1  ;;  %v344_v37 = vrot.slane %v342_v31, 1  ;;  %v352_v39 = vshrl.u32 %v1786_v25, 16  ;;  %v1458_v45 = vld [vmem:[#allocation5] sm:$0xff]   ;;  %v1459_v49 = vld [vmem:[#allocation5 + $0x48] sm:$0xff]   ;;  %v1461_v54 = vld [vmem:[#allocation5 + $0x50] sm:$0xff]   ;;  %p1540_p10 = scmp.ne.s32.totalorder %s1854_s18, %s1539_s21 }
  0x5b   : > { %1253 = vmatpush3.bf16.msra.mxu0 %v1437_v8  ;;  %1329 = vmatpush3.bf16.msra.mxu1 %v1436_v7  ;;  %v347_v32 = vshll.u32 %v1186_v26, 16  ;;  %v367_v34 = vrot.slane %v1186_v26, 1  ;;  %v354_v42 = vshll.u32 %v1786_v25, 16  ;;  %v1462_v50 = vld [vmem:[#allocation5 + $0x80] sm:$0xff]   ;;  %v1460_v53 = vld [vmem:[#allocation5 + $0x8] sm:$0xff]   ;;  %v1463_v56 = vld [vmem:[#allocation5 + $0x10] sm:$0xff]  }
  0x5c   : > { %1254 = vmatprep.subr.bf16.mxu0 %v1438_v9  ;;  %1330 = vmatprep.subr.bf16.mxu1 %v1439_v10  ;;  %v370_v36 = vrot.slane %v1187_v28, 1  ;;  %v359_v43 = vshll.u32 %v1187_v28, 16  ;;  %v345_v44 = vor.u32 %v344_v37, %v340_v30  ;;  %v1464_v57 = vld [vmem:[#allocation5 + $0x58] sm:$0xff]   ;;  %v1465_v58 = vld [vmem:[#allocation5 + $0x88] sm:$0xff]   ;;  %v1467_v60 = vld [vmem:[#allocation5 + $0x60] sm:$0xff]   ;;  %p1924_p1 = scmp.ne.s32.totalorder %s1911_s11, 0 }
  0x5d   : > { %v349_v38 = vrot.slane %v347_v32, 1  ;;  %v368_v41 = vsel %vm365_vm1, %v366_v33, %v367_v34  ;;  %v356_v47 = vrot.slane %v354_v42, 1  ;;  %v1466_v59 = vld [vmem:[#allocation5 + $0x18] sm:$0xff]   ;;  %v1468_v61 = vld [vmem:[#allocation5 + $0x90] sm:$0xff]   ;;  %v1469_v62 = vld [vmem:[#allocation5 + $0x20] sm:$0xff]   ;;  %s1615_s22 = smov [#allocation7]  }
  0x5e   : > { %1340 = vmatprep.mubr.bf16.mxu1 %v368_v41  ;;  %v371_v46 = vsel %vm365_vm1, %v369_v35, %v370_v36  ;;  %v361_v48 = vrot.slane %v359_v43, 1  ;;  %v1470_v63 = vld [vmem:[#allocation5 + $0x68] sm:$0xff]   ;;  %v1471_v0 = vld [vmem:[#allocation5 + $0x98] sm:$0xff]   ;;  %v1473_v2 = vld [vmem:[#allocation5 + $0x70] sm:$0xff]   ;;  %p1541_p2 = pnand %p1540_p10, %p1924_p1  ;;  %s1543_s23 = sshll.u32 %s1615_s22, 4  ;;  %s1544_s23 = int_to_ptr.vmem [resolvable:$false] %s1543_s23 }
  0x5f   : > { %1255 = vmatpush3.bf16.msra.mxu0 %v1440_v11  ;;  %1331 = vmatpush3.bf16.msra.mxu1 %v1439_v10  ;;  %v350_v51 = vsel %vm338_vm0, %v345_v44, %v349_v38  ;;  %v357_v52 = vor.u32 %v356_v47, %v352_v39  ;;  %v1472_v1 = vld [vmem:[#allocation5 + $0x28] sm:$0xff]   ;;  %v1474_v3 = vld [vmem:[#allocation5 + $0xa0] sm:$0xff]   ;;  %v1475_v4 = vld [vmem:[#allocation5 + $0x30] sm:$0xff]   ;;  %s1545_s29 = scalar_lea.vmem %s1544_s23, 1024  ;;  %p1546_p4 = scmp.lt.s32.totalorder %s1854_s18, %s1544_s23 }
  0x60   : > { %1256 = vmatprep.subr.bf16.mxu0 %v1441_v12  ;;  %1332 = vmatprep.subr.bf16.mxu1 %v1442_v13  ;;  %v1476_v5 = vld [vmem:[#allocation5 + $0x78] sm:$0xff]   ;;  %v1477_v6 = vld [vmem:[#allocation5 + $0xa8] sm:$0xff]   ;;  %v1479_v8 = vld [vmem:[#allocation5 + $0xb0] sm:$0xff]   ;;  %p1542_p3 = pneg %p1541_p2  ;;  %p1547_p7 = scmp.lt.s32.totalorder %s1545_s29, %s1539_s21 }
  0x61   : > { %598 = vmatprep.mubr.bf16.mxu0 %v350_v51  ;;  %v362_v55 = vsel %vm338_vm0, %v357_v52, %v361_v48  ;;  %v1478_v7 = vld [vmem:[#allocation5 + $0x38] sm:$0xff]   ;;  %vm1812_vm5 = vmand %vm708_vm2, %vm709_vm3 }
  0x62   : > { %v1480_v9 = vld [vmem:[#allocation5 + $0xb8] sm:$0xff]   ;;  %vm1817_vm6 = vmand %vm719_vm4, %vm338_vm0  ;;  %p1548_p8 = por %p1547_p7, %p1546_p4 }
  0x63   : > { %1257 = vmatpush3.bf16.msra.mxu0 %v1443_v14  ;;  %1333 = vmatpush3.bf16.msra.mxu1 %v1442_v13 }
  0x64   : > { %1258 = vmatprep.subr.bf16.mxu0 %v1444_v15  ;;  %1334 = vmatprep.subr.bf16.mxu1 %v1445_v16  ;;  %p1549_p11 = pnand %p1548_p8, %p1542_p3 }
  0x67   : > { %1259 = vmatpush3.bf16.msra.mxu0 %v1446_v17  ;;  %1335 = vmatpush3.bf16.msra.mxu1 %v1445_v16  ;;  %v1212_v17 = vld [vmem:[%s1901_s2] ss:$0 sm:$0xff] }
  0x68   : > { %1260 = vmatprep.subr.bf16.mxu0 %v1447_v18  ;;  %1336 = vmatprep.subr.bf16.mxu1 %v1448_v19 }
  0x6b   : > { %1261 = vmatpush3.bf16.msra.mxu0 %v1449_v20  ;;  %1337 = vmatpush3.bf16.msra.mxu1 %v1448_v19 }
  0x6c   : > { %1262 = vmatprep.subr.bf16.mxu0 %v1450_v21  ;;  %1338 = vmatprep.subr.bf16.mxu1 %v1451_v22 }
  0x6f   : > { %1263 = vmatpush3.bf16.msra.mxu0 %v1452_v29  ;;  %1339 = vmatpush3.bf16.msra.mxu1 %v1451_v22  ;;  %v1213_v22 = vld [vmem:[%s1902_s3] ss:$0 sm:$0xff] }
  0x70   : > { %1286 = vmatprep.subr.bf16.mxu0 %v1457_v40  ;;  %1344 = vmatprep.subr.bf16.mxu1 %v1462_v50 }
  0x72   : > { %599 = vmatmul.mubr.bf16.vlgmr.msra.gmra.mrb[0].mxu0 %v1782_v23  ;;  %1341 = vmatmul.mubr.bf16.vlgmr.msra.gmra.mrb[0].mxu1 %v371_v46 }
  0x73   : > { %1287 = vmatpush3.bf16.msra.mxu0 %v1458_v45  ;;  %1345 = vmatpush3.bf16.msra.mxu1 %v1462_v50 }
  0x74   : > { %606 = vmatprep.mubr.bf16.mxu0 %v362_v55  ;;  %1288 = vmatprep.subr.bf16.mxu0 %v1459_v49 }
  0x75   : > { %1346 = vmatprep.subr.bf16.mxu1 %v1465_v58 }
  0x77   : > { %1289 = vmatpush3.bf16.msra.mxu0 %v1460_v53  ;;  %1347 = vmatpush3.bf16.msra.mxu1 %v1465_v58 }
  0x78   : > { %1290 = vmatprep.subr.bf16.mxu0 %v1461_v54  ;;  %1348 = vmatprep.subr.bf16.mxu1 %v1468_v61 }
  0x7a   : > { %607 = vmatmul.mubr.bf16.gmra.mrb[4].mxu0 %v1786_v25 }
  0x7b   : > { %1291 = vmatpush3.bf16.msra.mxu0 %v1463_v56  ;;  %1349 = vmatpush3.bf16.msra.mxu1 %v1468_v61 }
  0x7c   : > { %1292 = vmatprep.subr.bf16.mxu0 %v1464_v57  ;;  %1350 = vmatprep.subr.bf16.mxu1 %v1471_v0 }
  0x7f   : > { %1293 = vmatpush3.bf16.msra.mxu0 %v1466_v59  ;;  %1351 = vmatpush3.bf16.msra.mxu1 %v1471_v0 }
  0x80   : > { %1294 = vmatprep.subr.bf16.mxu0 %v1467_v60  ;;  %1352 = vmatprep.subr.bf16.mxu1 %v1474_v3 }
  0x83   : > { %1295 = vmatpush3.bf16.msra.mxu0 %v1469_v62  ;;  %1353 = vmatpush3.bf16.msra.mxu1 %v1474_v3 }
  0x84   : > { %1296 = vmatprep.subr.bf16.mxu0 %v1470_v63  ;;  %1354 = vmatprep.subr.bf16.mxu1 %v1477_v6 }
  0x87   : > { %1297 = vmatpush3.bf16.msra.mxu0 %v1472_v1  ;;  %1355 = vmatpush3.bf16.msra.mxu1 %v1477_v6 }
  0x88   : > { %1298 = vmatprep.subr.bf16.mxu0 %v1473_v2  ;;  %1356 = vmatprep.subr.bf16.mxu1 %v1479_v8 }
  0x8b   : > { %1299 = vmatpush3.bf16.msra.mxu0 %v1475_v4  ;;  %1357 = vmatpush3.bf16.msra.mxu1 %v1479_v8 }
  0x8c   : > { %1300 = vmatprep.subr.bf16.mxu0 %v1476_v5  ;;  %1358 = vmatprep.subr.bf16.mxu1 %v1480_v9 }
  0x8f   : > { %1301 = vmatpush3.bf16.msra.mxu0 %v1478_v7  ;;  %1359 = vmatpush3.bf16.msra.mxu1 %v1480_v9 }
 0x145   : > { %v1264_v10 = vpop.f32.mrb[0].mxu0  ;;  %v1342_v11 = vpop.f32.mrb[0].mxu1 }
 0x146   : > { %v1265_v12 = vpop.f32.mrb[1].mxu0  ;;  %v649_v13 = vpop.f32.mrb[1].mxu1 }
 0x147   : > { %v1266_v14 = vadd.f32 %v1265_v12, %v1264_v10  ;;  %v1267_v15 = vpop.f32.mrb[2].mxu0  ;;  %v1343_v16 = vpop.f32.mrb[2].mxu1  ;;  %v1035_v10 = vunpack.c.l.bf16 %v1782_v23  ;;  %v1037_v12 = vunpack.c.l.bf16 %v1784_v24 }
 0x148   : > { %v1268_v18 = vpop.f32.mrb[3].mxu0  ;;  %v652_v19 = vpop.f32.mrb[3].mxu1 }
 0x149   : > { %v650_v20 = vadd.f32 %v1266_v14, %v649_v13  ;;  %v1269_v21 = vadd.f32 %v1268_v18, %v1267_v15  ;;  %v1038_v13 = vunpack.c.l.bf16 %v1786_v25  ;;  %v1039_v14 = vunpack.c.h.bf16 %v1786_v25  ;;  %v1239_v25 = vld [vmem:[%s1905_s6] ss:$0 sm:$0xff] }
 0x14b   : > { %v671_v26 = vmul.f32 %v1212_v17, %v650_v20  ;;  %v653_v28 = vadd.f32 %v1269_v21, %v652_v19  ;;  %v1238_v19 = vld [vmem:[%s1904_s5] ss:$0 sm:$0xff]  ;;  %v1048_v21 = vrot.slane %v1035_v10, 1 }
 0x14d   : > { %v682_v29 = vadd.f32 %v1213_v22, %v671_v26  ;;  %v672_v30 = vmul.f32 %v1212_v17, %v653_v28  ;;  %v1270_v31 = vpop.f32.mrb[4].mxu0  ;;  %v1051_v26 = vrot.slane %v1037_v12, 1 }
 0x14e   : > { %v1271_v32 = vpop.f32.mrb[5].mxu0 }
 0x14f   : > { %v683_v33 = vadd.f32 %v1213_v22, %v672_v30  ;;  %v1272_v34 = vadd.f32 %v1271_v32, %v1270_v31  ;;  %v1273_v35 = vpop.f32.mrb[6].mxu0  ;;  %v686_v37 = vmax.f32 %v682_v29, 0.0  ;;  %v1054_v30 = vrot.slane %v1039_v14, 1 }
 0x150   : > { %v1274_v36 = vpop.f32.mrb[7].mxu0 }
 0x151   : > { %v687_v38 = vmax.f32 %v683_v33, 0.0  ;;  %v658_v39 = vadd.f32 %v1342_v11, %v1272_v34  ;;  %v1275_v40 = vadd.f32 %v1274_v36, %v1273_v35  ;;  %v1036_v11 = vunpack.c.h.bf16 %v1782_v23 }
 0x153   : > { %v673_v41 = vmul.f32 %v1212_v17, %v658_v39  ;;  %v661_v42 = vadd.f32 %v1343_v16, %v1275_v40  ;;  %v690_v43 = vpack.c.bf16 %v687_v38, %v686_v37 }
 0x155   : > { %v674_v44 = vmul.f32 %v1212_v17, %v661_v42  ;;  %v693_v45 = vshrl.u32 %v690_v43, 16  ;;  %v696_v46 = vshll.u32 %v690_v43, 16  ;;  %947 = vmatprep.mubr.bf16.mxu0 %v690_v43  ;;  %v684_v47 = vadd.f32 %v1213_v22, %v673_v41 }
 0x156   : > { %v1040_v17 = vunpack.c.l.bf16 %v1790_v27  ;;  %v1053_v27 = vrot.slane %v1038_v13, 1 }
 0x157   : > { %v695_v48 = vrot.slane %v693_v45, 7  ;;  %v713_v50 = vrot.slane %v696_v46, 1  ;;  %v685_v51 = vadd.f32 %v1213_v22, %v674_v44  ;;  %v688_v55 = vmax.f32 %v684_v47, 0.0 }
 0x158   : > { %v1049_v22 = vrot.slane %v1036_v11, 1  ;;  %v1056_v37 = vrot.slane %v1040_v17, 1  ;;  %v1055_v43 = vsel %vm365_vm1, %v1053_v27, %v1054_v30 }
 0x159   : > { %v698_v53 = vor.u32 %v696_v46, %v695_v48  ;;  %v714_v54 = vor.u32 %v713_v50, %v693_v45  ;;  %v689_v56 = vmax.f32 %v685_v51, 0.0 }
 0x15a   : > { %v1050_v38 = vsel %vm365_vm1, %v1048_v21, %v1049_v22  ;;  %v1052_v44 = vsel %vm365_vm1, %v1049_v22, %v1051_v26  ;;  %v1057_v49 = vsel %vm365_vm1, %v1054_v30, %v1056_v37 }
 0x15b   : > { %v711_v57 = vsel %vm1812_vm5, 0, %v698_v53  ;;  %v721_v58 = vsel %vm1817_vm6, %v714_v54, 0  ;;  %v691_v59 = vpack.c.bf16 %v689_v56, %v688_v55 }
 0x15c   : > { %948 = vmatmul.mubr.bf16.vlgmr.msra.gmra.mrb[8].mxu0 %v711_v57  ;;  %1360 = vmatprep.mubr.bf16.mxu1 %v721_v58 }
 0x15d   : > { %955 = vmatprep.mubr.bf16.mxu0 %v691_v59  ;;  %v700_v60 = vshrl.u32 %v691_v59, 16  ;;  %v703_v61 = vshll.u32 %v691_v59, 16 }
 0x15f   : > { %v702_v62 = vrot.slane %v700_v60, 7  ;;  %v715_v63 = vrot.slane %v703_v61, 1 }
 0x161   : > { %v705_v0 = vor.u32 %v703_v61, %v702_v62  ;;  %v716_v1 = vor.u32 %v715_v63, %v700_v60 }
 0x163   : > { %v712_v2 = vsel %vm1812_vm5, 0, %v705_v0  ;;  %v722_v3 = vsel %vm1817_vm6, %v716_v1, 0 }
 0x164   : > { %956 = vmatmul.mubr.bf16.gmra.mrb[12].mxu0 %v712_v2  ;;  %1361 = vmatmul.mubr.bf16.vlgmr.msra.gmra.mrb[4].mxu1 %v722_v3 }
 0x22f   : > { %v1302_v4 = vpop.f32.mrb[8].mxu0 }
 0x230   : > { %v1303_v5 = vpop.f32.mrb[9].mxu0 }
 0x231   : > { %v1304_v6 = vadd.f32 %v1303_v5, %v1302_v4  ;;  %v1305_v7 = vpop.f32.mrb[10].mxu0 }
 0x232   : > { %v1306_v8 = vpop.f32.mrb[11].mxu0 }
 0x233   : > { %v1307_v9 = vadd.f32 %v1306_v8, %v1305_v7 }
 0x237   : > { %v1308_v15 = vpop.f32.mrb[12].mxu0  ;;  %v1362_v16 = vpop.f32.mrb[4].mxu1 }
 0x238   : > { %v1309_v18 = vpop.f32.mrb[13].mxu0  ;;  %v998_v20 = vpop.f32.mrb[5].mxu1 }
 0x239   : > { %v1310_v23 = vadd.f32 %v1309_v18, %v1308_v15  ;;  %v999_v24 = vadd.f32 %v1304_v6, %v998_v20  ;;  %v1311_v28 = vpop.f32.mrb[14].mxu0  ;;  %v1363_v29 = vpop.f32.mrb[6].mxu1 }
 0x23a   : > { %v1312_v31 = vpop.f32.mrb[15].mxu0  ;;  %v1001_v32 = vpop.f32.mrb[7].mxu1 }
 0x23b   : > { %v1007_v33 = vadd.f32 %v1362_v16, %v1310_v23  ;;  %v1020_v34 = vmul.f32 %v1238_v19, %v999_v24  ;;  %v1313_v35 = vadd.f32 %v1312_v31, %v1311_v28  ;;  %v1002_v36 = vadd.f32 %v1307_v9, %v1001_v32 }
 0x23d   : > { %v1022_v39 = vmul.f32 %v1238_v19, %v1007_v33  ;;  %v1031_v40 = vadd.f32 %v1239_v25, %v1020_v34  ;;  %v1010_v41 = vadd.f32 %v1363_v29, %v1313_v35  ;;  %v1021_v42 = vmul.f32 %v1238_v19, %v1002_v36 }
 0x23f   : > { %v1033_v45 = vadd.f32 %v1239_v25, %v1022_v39  ;;  %v1062_v46 = vadd.f32 %v1050_v38, %v1031_v40  ;;  %v1023_v47 = vmul.f32 %v1238_v19, %v1010_v41  ;;  %v1032_v48 = vadd.f32 %v1239_v25, %v1021_v42 }
 0x241   : > { %v1064_v50 = vadd.f32 %v1055_v43, %v1033_v45  ;;  %v1066_v51 = vmax.f32 %v1062_v46, 0.0  ;;  %v1034_v52 = vadd.f32 %v1239_v25, %v1023_v47  ;;  %v1063_v53 = vadd.f32 %v1052_v44, %v1032_v48 }
 0x243   : > { %v1068_v54 = vmax.f32 %v1064_v50, 0.0  ;;  %1070 = vst [vmem:[%s304_s16] sm:$0xff] %v1066_v51  ;;  %v1065_v55 = vadd.f32 %v1057_v49, %v1034_v52  ;;  %v1067_v56 = vmax.f32 %v1063_v53, 0.0 }
 0x245   : > { %1072 = vst [vmem:[%s304_s16 + $0x10] sm:$0xff] %v1068_v54  ;;  %v1069_v57 = vmax.f32 %v1065_v55, 0.0  ;;  %1071 = vst [vmem:[%s304_s16 + $0x8] sm:$0xff] %v1067_v56 }
 0x247   : > { %1073 = vst [vmem:[%s304_s16 + $0x18] sm:$0xff] %v1069_v57 }
 0x248   : > { %1552 = shalt.err (!%p1549_p11)
}
 0x249   : > { %s1553_s8 = scalar_lea.hbm %s1852_s20, 512  ;;  %s1557_s10 = scalar_lea.hbm %s1906_s7, 1024 }
 0x24a   : > { %p1554_p13 = scmp.ne.s32.totalorder %s1852_s20, %s1553_s8  ;;  %p1558_p6 = scmp.lt.u32.totalorder %s1852_s20, %s1906_s7 }
 0x24b   : > { %p1559_p9 = scmp.lt.u32.totalorder %s1557_s10, %s1553_s8  ;;  %p1561_p10 = scmp.lt.u32.totalorder %s1553_s8, %s1852_s20 }
 0x24c   : > { %p1555_p5 = pnand %p1554_p13, %p1924_p1 }
 0x24d   : > { %p1560_p12 = por %p1559_p9, %p1558_p6 }
 0x24e   : > { %p1556_p0 = pneg %p1555_p5 }
 0x24f   : > { %p1562_p2 = por %p1561_p10, %p1560_p12 }
 0x251   : > { %p1563_p3 = pnand %p1562_p2, %p1556_p0 }
 0x253   : > { %1566 = shalt.err (!%p1563_p3)
}
 0x254   : > { %s1616_s16 = smov 128   ;;  %s1617_s14 = smov 8  }
 0x255   : > { %1373 = dma.vmem_to_hbm [thread:$0]  (%p1924_p1), %s1854_s18, 512, %s1852_s20, %s1858_s28, %s1616_s16, %s1616_s16, %s1617_s14  }
 0x256 PF: > { %p1390_p4 = scmp.ge.s32.totalorder %s1609_s27, 2  ;;  %s1104_s17 = sand.u32 1, %s1597_s24  }
 0x257   : > { %p1925_p7 = scmp.ne.s32.totalorder %s1912_s12, 0  ;;  %s1105_s21 = scalar_lea.sflag [#allocation4], %s1104_s17 }
 0x259   : > { %p1383_p8 = pnand %p1390_p4, %p1925_p7 }
 0x25b   : > { %1592 = dma.done.wait (!%p1383_p8), %s1105_s21, 512  }
 0x25c   : > { %1594 = vsyncadd (!%p1383_p8), %s1105_s21, 4294966784  ;;  %s1926_s22 = sld [smem:[#allocation11_spill]]  ;;  %p19_p11 = scmp.ge.s32.totalorder %s1683_s30, 4  }
 0x25d   : > { %s1927_s24 = smov %s1601_s25  ;;  %s1928_s25 = smov %s1605_s26 }
 0x25e   : > { %s1930_s27 = smov %s1683_s30  ;;  %21 = sbr.rel (!%p19_p11) target bundleno = 5 (0x5), region = 92 }
 0x262   : > { %s1929_s26 = smov %s1926_s22 }
 0x265   :  { %1110 = vsyncpa [#allocation3], 1 }
 0x266   :  { %1112 = vsyncpa [#allocation3 + $0x1], 1 }
 0x267   :  { %1113 = vsyncpa [#allocation6], 1 }
 0x268   :  { %1114 = vsyncpa [#allocation4], 1 }
 0x269   :  { %1116 = vsyncpa [#allocation4 + $0x1], 1 }

</bundles_post_ra>
